<compile_context>
chip_gen: v6e
topology: v6e:2x2x1
jax: 0.10.0
libtpu: 0.0.40
codegen_flags: <defaults>
</compile_context>

<pallas_src>
import math
from functools import partial

import jax
import jax.numpy as jnp
from jax import lax
from jax.experimental import pallas as pl
from jax.experimental.pallas import tpu as pltpu


# ------------------------- hardware-aware budgets ---------------------------

def _hw_budget():
    """(vmem_limit_bytes, dense_tile_target) derived from the TPU generation."""
    cap = None
    try:
        info = pltpu.get_tpu_info()
        for name in ("vmem_capacity_bytes", "vmem_bytes", "vmem_size_bytes"):
            cap = getattr(info, name, None)
            if cap:
                break
    except Exception:
        cap = None
    if not cap:
        cap = 128 * 1024 * 1024
    if cap <= 64 * 1024 * 1024:            # v7x-class: leave headroom for scratch
        return 48 * 1024 * 1024, 512
    return 100 * 1024 * 1024, 1024          # v5e / v6e: 128 MiB physical VMEM


def _dense_tiling(m, d, d_ff, vmem_budget, target):
    """Pick (m_padded, tm) for the row-tiled dense kernels (budget-aware)."""
    per_row = 48 * d + 32 * d + 4 * d_ff                  # blocks + f32 temps (rough)
    weights = 16 * d * d + 4 * d * d + 8 * d * d_ff        # bf16 weights, dbl-buffered
    cap_rows = (vmem_budget // 2 - weights) // max(per_row, 1)
    target = max(8, (min(target, int(max(cap_rows, 8))) // 8) * 8)
    for cand in range(min(target, m), 7, -1):               # exact divisor: no padding
        if cand % 8 == 0 and m % cand == 0:
            return m, cand
    tm = max(8, min(target, ((m + 7) // 8) * 8))            # else pad M up to a tm grid
    return ((m + tm - 1) // tm) * tm, tm


# ------------------------------ Pallas kernels ------------------------------

def _ln_proj_kernel(x_ref, g_ref, b_ref, w_ref, xn_ref, proj_ref, *, eps):
    """layernorm1 followed by one fused [lk|lv|rk|rv] projection (bf16 MXU)."""
    x = x_ref[...].astype(jnp.float32)
    mu = jnp.mean(x, axis=-1, keepdims=True)
    var = jnp.mean(jnp.square(x - mu), axis=-1, keepdims=True)
    xn = (x - mu) * lax.rsqrt(var + eps) * g_ref[...] + b_ref[...]
    xn_ref[...] = xn                                        # f32 residual / LN path
    proj_ref[...] = jnp.dot(xn.astype(w_ref.dtype), w_ref[...],
                            preferred_element_type=jnp.float32).astype(proj_ref.dtype)


def _edge_attn_kernel(lk_ref, lv_ref, rk_ref, rv_ref, mask_ref, out_ref,
                      *, d_k, vec_value):
    """Triangular edge attention for one (batch, y-tile, x-tile) grid step.

    Inputs are pre-arranged (wrapper-side, one-time) so no transposes are
    needed here:  lk/lv: (Na, H, tx, dk)   rk/rv: (Na, H, ty, dk)
                  mask:  (Na, tx, ty) int8 out:   (H, tx, ty, dk)
    """
    na, nh, tx, dk = lk_ref.shape
    ty = rk_ref.shape[2]
    f32 = jnp.float32

    # scores[g, x, y], g = a*H + h: one batched bf16 MXU dot, contract over d_k.
    lk = lk_ref[...].reshape(na * nh, tx, dk)
    rk = rk_ref[...].reshape(na * nh, ty, dk)
    scores = jnp.einsum('gxd,gyd->gxy', lk, rk,
                        preferred_element_type=f32) * jnp.float32(1.0 / math.sqrt(d_k))
    scores = scores.reshape(na, nh, tx, ty)

    # mask[a, x, y] pre-transposed in the wrapper; compare directly as integers.
    masked = mask_ref[...] != 0
    scores = jnp.where(masked[:, None, :, :], jnp.float32(-1e9), scores)

    # softmax over 'a' (leading axis), f32, EUP reciprocal for the normalization.
    m = jnp.max(scores, axis=0, keepdims=True)
    e = jnp.exp(scores - m)
    att = e * pl.reciprocal(jnp.sum(e, axis=0, keepdims=True), approx=True)
    # att: (Na, H, tx, ty)

    # Value weighting kept in f32 (safe on v5e: no bf16 VALU there).
    lv = lv_ref[...].astype(f32)                            # (Na, H, tx, dk)
    rv = rv_ref[...].astype(f32)                            # (Na, H, ty, dk)

    if vec_value:
        # fully vectorized: temp (Na, H, tx, ty, dk), reduce over leading 'a'.
        w = att[..., None] * rv[:, :, None, :, :]
        o = jnp.sum(w * lv[:, :, :, None, :], axis=0)       # (H, tx, ty, dk)
        out_ref[...] = o.astype(out_ref.dtype)
    else:
        # x-chunked fallback: keeps the live temp at (Na, H, ty, dk).
        for xx in range(tx):
            w = att[:, :, xx, :, None] * rv                  # (Na, H, ty, dk)
            row = jnp.sum(w * lv[:, :, xx, None, :], axis=0)  # (H, ty, dk)
            out_ref[:, xx, :, :] = row.astype(out_ref.dtype)


def _tail_kernel(attn_ref, xn_ref, wo_ref, g2_ref, b2_ref,
                 w1_ref, bb1_ref, w2_ref, bb2_ref, out_ref, *, eps):
    """out-proj + residual-1 + layernorm2 + FFN + residual-2, fully fused."""
    f32 = jnp.float32
    proj = jnp.dot(attn_ref[...], wo_ref[...], preferred_element_type=f32)
    h = xn_ref[...] + proj                                   # dropout1 = identity
    mu = jnp.mean(h, axis=-1, keepdims=True)
    var = jnp.mean(jnp.square(h - mu), axis=-1, keepdims=True)
    h2 = (h - mu) * lax.rsqrt(var + eps) * g2_ref[...] + b2_ref[...]
    z = jnp.dot(h2.astype(w1_ref.dtype), w1_ref[...],
                preferred_element_type=f32) + bb1_ref[...]
    z = jnp.maximum(z, 0.0)                                  # relu, dropout2 = identity
    y = jnp.dot(z.astype(w2_ref.dtype), w2_ref[...],
                preferred_element_type=f32) + bb2_ref[...]
    out_ref[...] = (h2 + y).astype(out_ref.dtype)            # dropout3 = identity


# ---------------------------- layer forward pass ----------------------------

def edge_transformer_layer(params, x, mask, num_heads, eps=1e-5):
    B, N, _, D = x.shape
    H = num_heads
    dk = D // H
    M = B * N * N
    d_ff = params["w1"].shape[1]
    f32, bf16 = jnp.float32, jnp.bfloat16

    vmem_limit, dense_target = _hw_budget()
    m_pad, tm = _dense_tiling(M, D, d_ff, vmem_limit, dense_target)

    # Weights pre-cast to bf16 once: halves weight HBM/VMEM and removes the
    # per-grid-step converts from the kernels.
    w_all = jnp.concatenate([params["w_lk"], params["w_lv"],
                             params["w_rk"], params["w_rv"]], axis=1).astype(bf16)
    w_out = params["w_out"].astype(bf16)
    w1 = params["w1"].astype(bf16)
    w2 = params["w2"].astype(bf16)

    row = lambda v: v.reshape(1, -1).astype(f32)

    x2d = x.reshape(M, D).astype(f32)
    if m_pad != M:
        x2d = jnp.pad(x2d, ((0, m_pad - M), (0, 0)))

    # ---- 1) layernorm1 + fused projection -------------------------------------
    xn, proj = pl.pallas_call(
        partial(_ln_proj_kernel, eps=eps),
        out_shape=(jax.ShapeDtypeStruct((m_pad, D), f32),
                   jax.ShapeDtypeStruct((m_pad, 4 * D), bf16)),
        grid=(m_pad // tm,),
        in_specs=[pl.BlockSpec((tm, D), lambda i: (i, 0)),
                  pl.BlockSpec((1, D), lambda i: (0, 0)),
                  pl.BlockSpec((1, D), lambda i: (0, 0)),
                  pl.BlockSpec((D, 4 * D), lambda i: (0, 0))],
        out_specs=(pl.BlockSpec((tm, D), lambda i: (i, 0)),
                   pl.BlockSpec((tm, 4 * D), lambda i: (i, 0))),
        compiler_params=pltpu.CompilerParams(
            dimension_semantics=("parallel",), vmem_limit_bytes=vmem_limit),
    )(x2d, row(params["ln1_w"]), row(params["ln1_b"]), w_all)

    # ---- rearrange projections for the attention kernel (one-time HBM passes) --
    # channels of proj: [lk | lv | rk | rv], each D = H*dk (row-major h, d)
    p = proj[:M].reshape(B, N, N, 4, H, dk)
    lk = jnp.transpose(p[:, :, :, 0], (0, 2, 3, 1, 4))       # (B, Na, H, Nx, dk)
    lv = jnp.transpose(p[:, :, :, 1], (0, 2, 3, 1, 4))       # (B, Na, H, Nx, dk)
    rk = jnp.transpose(p[:, :, :, 2], (0, 1, 3, 2, 4))       # (B, Na, H, Ny, dk)
    rv = jnp.transpose(p[:, :, :, 3], (0, 1, 3, 2, 4))       # (B, Na, H, Ny, dk)
    # mask[b, x, a, y] -> (b, a, x, y), int8 (4x less HBM traffic than f32)
    mask_am = jnp.transpose(mask, (0, 2, 1, 3)).astype(jnp.int8)

    # ---- 2) edge attention core ------------------------------------------------
    tx = 16 if N % 16 == 0 else (8 if N % 8 == 0 else N)

    def _attn_bytes(ty_, vec):
        blocks = (4 * (N * H * tx * dk * 2)                  # lk+lv bf16, dbl-buffered
                  + 4 * (N * H * ty_ * dk * 2)               # rk+rv
                  + 2 * (N * tx * ty_)                       # int8 mask
                  + 2 * (H * tx * ty_ * dk * 2))             # bf16 out
        temps = (12 * N * H * tx * ty_                       # scores / exp / att (f32)
                 + 4 * N * (tx + ty_) * H * dk               # f32 casts of lv / rv
                 + 8 * H * tx * ty_ * dk)                    # f32 output accum
        temps += 4 * N * H * ty_ * dk * (tx if vec else 1)   # value-product temp
        return blocks + temps

    budget = int(vmem_limit * 0.8)
    # y-tiles restricted to N or multiples of 128 so all block shapes stay legal
    ty_cands = [t for t in range(N, 0, -1)
                if N % t == 0 and (t == N or t % 128 == 0)]
    ty = next((t for t in ty_cands if _attn_bytes(t, True) <= budget), None)
    vec_value = ty is not None
    if not vec_value:
        ty = next((t for t in ty_cands if _attn_bytes(t, False) <= budget),
                  ty_cands[-1])

    attn5 = pl.pallas_call(
        partial(_edge_attn_kernel, d_k=dk, vec_value=vec_value),
        out_shape=jax.ShapeDtypeStruct((B, H, N, N, dk), bf16),
        grid=(B, N // ty, N // tx),
        in_specs=[pl.BlockSpec((None, N, H, tx, dk), lambda b, yi, xi: (b, 0, 0, xi, 0)),
                  pl.BlockSpec((None, N, H, tx, dk), lambda b, yi, xi: (b, 0, 0, xi, 0)),
                  pl.BlockSpec((None, N, H, ty, dk), lambda b, yi, xi: (b, 0, 0, yi, 0)),
                  pl.BlockSpec((None, N, H, ty, dk), lambda b, yi, xi: (b, 0, 0, yi, 0)),
                  pl.BlockSpec((None, N, tx, ty), lambda b, yi, xi: (b, 0, xi, yi))],
        out_specs=pl.BlockSpec((None, H, tx, ty, dk),
                               lambda b, yi, xi: (b, 0, xi, yi, 0)),
        compiler_params=pltpu.CompilerParams(
            dimension_semantics=("parallel", "parallel", "parallel"),
            vmem_limit_bytes=vmem_limit),
    )(lk, lv, rk, rv, mask_am)

    # back to channels-last rows (one-time HBM pass, bf16)
    attn2d = jnp.transpose(attn5, (0, 2, 3, 1, 4)).reshape(M, D)
    if m_pad != M:
        attn2d = jnp.pad(attn2d, ((0, m_pad - M), (0, 0)))

    # ---- 3) out-proj + residual-1 + LN2 + FFN + residual-2 (fully fused) -------
    out = pl.pallas_call(
        partial(_tail_kernel, eps=eps),
        out_shape=jax.ShapeDtypeStruct((m_pad, D), f32),
        grid=(m_pad // tm,),
        in_specs=[pl.BlockSpec((tm, D), lambda i: (i, 0)),
                  pl.BlockSpec((tm, D), lambda i: (i, 0)),
                  pl.BlockSpec((D, D), lambda i: (0, 0)),
                  pl.BlockSpec((1, D), lambda i: (0, 0)),
                  pl.BlockSpec((1, D), lambda i: (0, 0)),
                  pl.BlockSpec((D, d_ff), lambda i: (0, 0)),
                  pl.BlockSpec((1, d_ff), lambda i: (0, 0)),
                  pl.BlockSpec((d_ff, D), lambda i: (0, 0)),
                  pl.BlockSpec((1, D), lambda i: (0, 0))],
        out_specs=pl.BlockSpec((tm, D), lambda i: (i, 0)),
        compiler_params=pltpu.CompilerParams(
            dimension_semantics=("parallel",), vmem_limit_bytes=vmem_limit),
    )(attn2d, xn, w_out, row(params["ln2_w"]), row(params["ln2_b"]),
      w1, row(params["b1"]), w2, row(params["b2"]))

    return out[:M].reshape(B, N, N, D)


# ---------------------------- pure-JAX reference ----------------------------

def reference_layer(params, x, mask, num_heads, mm_dtype=jnp.float32, eps=1e-5):
    B, N, _, D = x.shape
    H = num_heads
    dk = D // H
    f32 = jnp.float32

    def mm(a, w):
        return jnp.dot(a.astype(mm_dtype), w.astype(mm_dtype),
                       preferred_element_type=f32)

    def rnd(t):  # mimic bf16 storage of the big intermediates in the kernel path
        return t.astype(mm_dtype).astype(f32) if mm_dtype != jnp.float32 else t

    def ln(t, g, b):
        mu = t.mean(-1, keepdims=True)
        v = ((t - mu) ** 2).mean(-1, keepdims=True)
        return (t - mu) / jnp.sqrt(v + eps) * g + b

    h = ln(x.astype(f32), params["ln1_w"], params["ln1_b"])
    lk = rnd(mm(h, params["w_lk"])).reshape(B, N, N, H, dk)
    rk = rnd(mm(h, params["w_rk"])).reshape(B, N, N, H, dk)
    lv = rnd(mm(h, params["w_lv"])).reshape(B, N, N, H, dk)
    rv = rnd(mm(h, params["w_rv"])).reshape(B, N, N, H, dk)
    scores = jnp.einsum('bxahd,bayhd->bxayh', lk, rk) / math.sqrt(dk)
    scores = jnp.where(mask[..., None], -1e9, scores)
    att = jax.nn.softmax(scores, axis=2)
    val = jnp.einsum('bxahd,bayhd->bxayhd', lv, rv)
    o = jnp.einsum('bxayh,bxayhd->bxyhd', att, val).reshape(B, N, N, D)
    o = mm(rnd(o), params["w_out"])
    h2 = h + o
    h3 = ln(h2, params["ln2_w"], params["ln2_b"])
    ff = mm(jnp.maximum(mm(h3, params["w1"]) + params["b1"], 0.0),
            params["w2"]) + params["b2"]
    return h3 + ff


# ----------------------------------- main -----------------------------------

def init_params(key, D, d_ff):
    ks = jax.random.split(key, 13)
    s_in = 1.0 / math.sqrt(D)
    s_ff = 1.0 / math.sqrt(d_ff)
    return {
        "ln1_w": 1.0 + 0.1 * jax.random.normal(ks[0], (D,), jnp.float32),
        "ln1_b": 0.1 * jax.random.normal(ks[1], (D,), jnp.float32),
        "ln2_w": 1.0 + 0.1 * jax.random.normal(ks[2], (D,), jnp.float32),
        "ln2_b": 0.1 * jax.random.normal(ks[3], (D,), jnp.float32),
        "w_lk": s_in * jax.random.normal(ks[4], (D, D), jnp.float32),
        "w_rk": s_in * jax.random.normal(ks[5], (D, D), jnp.float32),
        "w_lv": s_in * jax.random.normal(ks[6], (D, D), jnp.float32),
        "w_rv": s_in * jax.random.normal(ks[7], (D, D), jnp.float32),
        "w_out": s_in * jax.random.normal(ks[8], (D, D), jnp.float32),
        "w1": s_in * jax.random.normal(ks[9], (D, d_ff), jnp.float32),
        "b1": 0.05 * jax.random.normal(ks[10], (d_ff,), jnp.float32),
        "w2": s_ff * jax.random.normal(ks[11], (d_ff, D), jnp.float32),
        "b2": 0.05 * jax.random.normal(ks[12], (D,), jnp.float32),
    }


if __name__ == "__main__":
    B, N, D, H = 2, 8, 32, 4
    d_ff = 4 * D

    key = jax.random.PRNGKey(0)
    k_x, k_m, k_p = jax.random.split(key, 3)

    x = jax.random.normal(k_x, (B, N, N, D), jnp.float32)
    # mask[b, x, a, y] == True  ->  score masked to -1e9 (PyTorch masked_fill)
    mask = jax.random.bernoulli(k_m, 0.25, (B, N, N, N))
    params = init_params(k_p, D, d_ff)

    out = jax.block_until_ready(edge_transformer_layer(params, x, mask, H))
    assert out.shape == (B, N, N, D)

    # Implementation check vs. a reference with the same precision policy
    # (bf16 matmul operands / bf16-stored intermediates, f32 accumulation,
    #  f32 layernorm / softmax).
    ref = reference_layer(params, x, mask, H, mm_dtype=jnp.bfloat16)
    err = float(jnp.max(jnp.abs(out - ref)))
    assert jnp.allclose(out, ref, atol=2e-2, rtol=2e-2), err

    # Semantic sanity vs. the full-f32 PyTorch-faithful reference; the gap is
    # bf16 matmul / storage rounding only.
    ref32 = reference_layer(params, x, mask, H, mm_dtype=jnp.float32)
    err32 = float(jnp.max(jnp.abs(out - ref32)))
    assert err32 < 0.5, err32

    print("KERNEL_OK")
</pallas_src>

<mosaic_0001>
module attributes {stable_mosaic.version = 11 : i64} {
  func.func @_ln_proj_kernel(%arg0: i32, %arg1: memref<128x32xf32, #tpu.memory_space<vmem>>, %arg2: memref<1x32xf32, #tpu.memory_space<vmem>>, %arg3: memref<1x32xf32, #tpu.memory_space<vmem>>, %arg4: memref<32x128xbf16, #tpu.memory_space<vmem>>, %arg5: memref<128x32xf32, #tpu.memory_space<vmem>>, %arg6: memref<128x128xbf16, #tpu.memory_space<vmem>>) attributes {dimension_semantics = [#tpu.dimension_semantics<parallel>], iteration_bounds = array<i64: 1>, scalar_prefetch = 0 : i64, scratch_operands = 0 : i64, tpu.core_type = #tpu.core_type<tc>, window_params = [{transform_indices = @transform_0, window_bounds = array<i64: 128, 32>}, {pipeline_mode = #tpu.pipeline_mode<synchronous>, transform_indices = @transform_1, window_bounds = array<i64: 1, 32>}, {pipeline_mode = #tpu.pipeline_mode<synchronous>, transform_indices = @transform_2, window_bounds = array<i64: 1, 32>}, {pipeline_mode = #tpu.pipeline_mode<synchronous>, transform_indices = @transform_3, window_bounds = array<i64: 32, 128>}, {transform_indices = @transform_4, window_bounds = array<i64: 128, 32>}, {transform_indices = @transform_5, window_bounds = array<i64: 128, 128>}]} {
    %c0 = arith.constant 0 : index
    %c0_0 = arith.constant 0 : index
    %0 = vector.load %arg1[%c0, %c0_0] : memref<128x32xf32, #tpu.memory_space<vmem>>, vector<128x32xf32>
    %cst = arith.constant dense<0.000000e+00> : vector<128xf32>
    %1 = vector.multi_reduction <add>, %0, %cst [1] : vector<128x32xf32> to vector<128xf32>
    %2 = vector.shape_cast %1 : vector<128xf32> to vector<128x1xf32>
    %cst_1 = arith.constant 3.200000e+01 : f32
    %3 = vector.broadcast %cst_1 : f32 to vector<128x1xf32>
    %4 = arith.divf %2, %3 : vector<128x1xf32>
    %5 = vector.broadcast %4 : vector<128x1xf32> to vector<128x32xf32>
    %6 = arith.subf %0, %5 : vector<128x32xf32>
    %7 = arith.mulf %6, %6 : vector<128x32xf32>
    %cst_2 = arith.constant dense<0.000000e+00> : vector<128xf32>
    %8 = vector.multi_reduction <add>, %7, %cst_2 [1] : vector<128x32xf32> to vector<128xf32>
    %9 = vector.shape_cast %8 : vector<128xf32> to vector<128x1xf32>
    %cst_3 = arith.constant 3.200000e+01 : f32
    %10 = vector.broadcast %cst_3 : f32 to vector<128x1xf32>
    %11 = arith.divf %9, %10 : vector<128x1xf32>
    %12 = vector.broadcast %4 : vector<128x1xf32> to vector<128x32xf32>
    %13 = arith.subf %0, %12 : vector<128x32xf32>
    %cst_4 = arith.constant 9.99999974E-6 : f32
    %14 = vector.broadcast %cst_4 : f32 to vector<128x1xf32>
    %15 = arith.addf %11, %14 : vector<128x1xf32>
    %16 = math.rsqrt %15 : vector<128x1xf32>
    %17 = vector.broadcast %16 : vector<128x1xf32> to vector<128x32xf32>
    %18 = arith.mulf %13, %17 : vector<128x32xf32>
    %c0_5 = arith.constant 0 : index
    %c0_6 = arith.constant 0 : index
    %19 = vector.load %arg2[%c0_5, %c0_6] : memref<1x32xf32, #tpu.memory_space<vmem>>, vector<1x32xf32>
    %20 = vector.broadcast %19 : vector<1x32xf32> to vector<128x32xf32>
    %21 = arith.mulf %18, %20 : vector<128x32xf32>
    %c0_7 = arith.constant 0 : index
    %c0_8 = arith.constant 0 : index
    %22 = vector.load %arg3[%c0_7, %c0_8] : memref<1x32xf32, #tpu.memory_space<vmem>>, vector<1x32xf32>
    %23 = vector.broadcast %22 : vector<1x32xf32> to vector<128x32xf32>
    %24 = arith.addf %21, %23 : vector<128x32xf32>
    %c0_9 = arith.constant 0 : index
    %c0_10 = arith.constant 0 : index
    %25 = vector.load %arg5[%c0_9, %c0_10] : memref<128x32xf32, #tpu.memory_space<vmem>>, vector<128x32xf32>
    tpu.vector_store %arg5[%c0_9, %c0_10], %24 {strides = array<i32>} : memref<128x32xf32, #tpu.memory_space<vmem>>, vector<128x32xf32>,
    %26 = arith.truncf %24 : vector<128x32xf32> to vector<128x32xbf16>
    %c0_11 = arith.constant 0 : index
    %c0_12 = arith.constant 0 : index
    %27 = vector.load %arg4[%c0_11, %c0_12] : memref<32x128xbf16, #tpu.memory_space<vmem>>, vector<32x128xbf16>
    %cst_13 = arith.constant dense<0.000000e+00> : vector<128x128xf32>
    %28 = tpu.matmul %26, %27, %cst_13 {dimension_numbers = #tpu.dot_dimension_numbers<[1], [0], [0], [1], [0, 0, 1, 1], [], []>} : vector<128x32xbf16>, vector<32x128xbf16>, vector<128x128xf32> -> vector<128x128xf32>
    %29 = arith.truncf %28 : vector<128x128xf32> to vector<128x128xbf16>
    %c0_14 = arith.constant 0 : index
    %c0_15 = arith.constant 0 : index
    %30 = vector.load %arg6[%c0_14, %c0_15] : memref<128x128xbf16, #tpu.memory_space<vmem>>, vector<128x128xbf16>
    tpu.vector_store %arg6[%c0_14, %c0_15], %29 {strides = array<i32>} : memref<128x128xbf16, #tpu.memory_space<vmem>>, vector<128x128xbf16>,
    return
  }
  func.func @transform_0(%arg0: i32) -> (i32, i32) {
    %c0_i32 = arith.constant 0 : i32
    %c0_i32_0 = arith.constant 0 : i32
    return %arg0, %c0_i32 : i32, i32
  }
  func.func @transform_1(%arg0: i32) -> (i32, i32) {
    %c0_i32 = arith.constant 0 : i32
    %c0_i32_0 = arith.constant 0 : i32
    %c0_i32_1 = arith.constant 0 : i32
    return %c0_i32, %c0_i32_0 : i32, i32
  }
  func.func @transform_2(%arg0: i32) -> (i32, i32) {
    %c0_i32 = arith.constant 0 : i32
    %c0_i32_0 = arith.constant 0 : i32
    %c0_i32_1 = arith.constant 0 : i32
    return %c0_i32, %c0_i32_0 : i32, i32
  }
  func.func @transform_3(%arg0: i32) -> (i32, i32) {
    %c0_i32 = arith.constant 0 : i32
    %c0_i32_0 = arith.constant 0 : i32
    %c0_i32_1 = arith.constant 0 : i32
    return %c0_i32, %c0_i32_0 : i32, i32
  }
  func.func @transform_4(%arg0: i32) -> (i32, i32) {
    %c0_i32 = arith.constant 0 : i32
    %c0_i32_0 = arith.constant 0 : i32
    return %arg0, %c0_i32 : i32, i32
  }
  func.func @transform_5(%arg0: i32) -> (i32, i32) {
    %c0_i32 = arith.constant 0 : i32
    %c0_i32_0 = arith.constant 0 : i32
    return %arg0, %c0_i32 : i32, i32
  }
}

</mosaic_0001>

<bundles_post_ra>
// kernel: tpu_custom_call.1
= control target key start
LH: loop header
LB: loop body
LE: loop exit
PB: predicated region body
PF: predicated region fallthrough
CT: control target
= control target key end

     0   :  { %vm37_vm0 = vcmask 261120   ;;  %s1094_s0 = inlined_call_operand.vmem [shape: f32[128,32], index: 0, kind: input, shape index: {}]   ;;  %s1095_s1 = inlined_call_operand.vmem [shape: f32[1,32], index: 1, kind: input, shape index: {}]   ;;  %s1096_s2 = inlined_call_operand.vmem [shape: f32[1,32], index: 2, kind: input, shape index: {}]   ;;  %s1097_s3 = inlined_call_operand.vmem [shape: bf16[32,128], index: 3, kind: input, shape index: {}]   ;;  %s1098_s4 = inlined_call_operand.vmem [shape: f32[128,32], index: 4, kind: output, shape index: {0}]   ;;  %s1099_s5 = inlined_call_operand.hbm [shape: bf16[128,128], index: 5, kind: output, shape index: {1}]  }
   0x1   :  { %v21_v0 = vld [vmem:[%s1094_s0] sm:$0xff]  ;;  %v22_v2 = vld [vmem:[%s1094_s0 + $0x8] sm:$0xff]  ;;  %v23_v8 = vld [vmem:[%s1094_s0 + $0x10] sm:$0xff] }
   0x2   :  { %v29_v1 = vld [vmem:[%s1094_s0 + $0x40] sm:$0xff]  ;;  %v38_v3 = vsel %vm37_vm0, %v21_v0, 0.0  ;;  %v30_v5 = vld [vmem:[%s1094_s0 + $0x48] sm:$0xff]  ;;  %v41_v6 = vsel %vm37_vm0, %v22_v2, 0.0  ;;  %v24_v9 = vld [vmem:[%s1094_s0 + $0x18] sm:$0xff]  ;;  %v44_v10 = vsel %vm37_vm0, %v23_v8, 0.0 }
   0x3   :  { %v62_v4 = vsel %vm37_vm0, %v29_v1, 0.0  ;;  %39 = vadd.xlane.f32.xlu0 %v38_v3  ;;  %v65_v7 = vsel %vm37_vm0, %v30_v5, 0.0  ;;  %v47_v11 = vsel %vm37_vm0, %v24_v9, 0.0 }
   0x4   :  { %63 = vadd.xlane.f32.xlu1 %v62_v4 }
   0x7   :  { %42 = vadd.xlane.f32.xlu0 %v41_v6 }
   0x8   :  { %66 = vadd.xlane.f32.xlu1 %v65_v7 }
   0x9   :  { %11 = vsyncpa [#allocation3], 0  ;;  %v798_v12 = vld [vmem:[%s1094_s0 + $0x50] sm:$0xff]  ;;  %v803_v13 = vld [vmem:[%s1094_s0 + $0x58] sm:$0xff] }
   0xa   :  { %v68_v14 = vsel %vm37_vm0, %v798_v12, 0.0  ;;  %v71_v15 = vsel %vm37_vm0, %v803_v13, 0.0  ;;  %v812_v16 = vld [vmem:[%s1094_s0 + $0x20] sm:$0xff]  ;;  %v817_v17 = vld [vmem:[%s1094_s0 + $0x28] sm:$0xff]  ;;  %v840_v24 = vld [vmem:[%s1094_s0 + $0x30] sm:$0xff] }
   0xb   :  { %45 = vadd.xlane.f32.xlu0 %v44_v10  ;;  %v50_v18 = vsel %vm37_vm0, %v812_v16, 0.0  ;;  %v53_v19 = vsel %vm37_vm0, %v817_v17, 0.0  ;;  %v826_v20 = vld [vmem:[%s1094_s0 + $0x60] sm:$0xff]  ;;  %v831_v21 = vld [vmem:[%s1094_s0 + $0x68] sm:$0xff]  ;;  %v845_v25 = vld [vmem:[%s1094_s0 + $0x38] sm:$0xff]  ;;  %v56_v26 = vsel %vm37_vm0, %v840_v24, 0.0 }
   0xc   :  { %48 = vadd.xlane.f32.xlu1 %v47_v11  ;;  %v74_v22 = vsel %vm37_vm0, %v826_v20, 0.0  ;;  %v77_v23 = vsel %vm37_vm0, %v831_v21, 0.0  ;;  %v59_v27 = vsel %vm37_vm0, %v845_v25, 0.0  ;;  %v854_v28 = vld [vmem:[%s1094_s0 + $0x70] sm:$0xff]  ;;  %v859_v29 = vld [vmem:[%s1094_s0 + $0x78] sm:$0xff] }
   0xd   :  { %v80_v30 = vsel %vm37_vm0, %v854_v28, 0.0  ;;  %v83_v31 = vsel %vm37_vm0, %v859_v29, 0.0 }
   0xf   :  { %69 = vadd.xlane.f32.xlu0 %v68_v14 }
  0x10   :  { %72 = vadd.xlane.f32.xlu1 %v71_v15 }
  0x13   :  { %51 = vadd.xlane.f32.xlu0 %v50_v18 }
  0x14   :  { %54 = vadd.xlane.f32.xlu1 %v53_v19 }
  0x17   :  { %75 = vadd.xlane.f32.xlu0 %v74_v22 }
  0x18   :  { %78 = vadd.xlane.f32.xlu1 %v77_v23 }
  0x1b   :  { %57 = vadd.xlane.f32.xlu0 %v56_v26 }
  0x1c   :  { %60 = vadd.xlane.f32.xlu1 %v59_v27 }
  0x1f   :  { %81 = vadd.xlane.f32.xlu0 %v80_v30 }
  0x20   :  { %84 = vadd.xlane.f32.xlu1 %v83_v31 }
  0x8c   :  { %v40_v32 = vpop.xlane.xlu0 %39 }
  0x8d   :  { %v64_v33 = vpop.xlane.xlu1 %63  ;;  %v87_v34 = vmul.f32 0.03125, %v40_v32 }
  0x8e   :  { %v95_v35 = vmul.f32 0.03125, %v64_v33 }
  0x8f   :  { %v865_v36 = vsub.f32 %v21_v0, %v87_v34 }
  0x90   :  { %v867_v37 = vsub.f32 %v29_v1, %v95_v35  ;;  %v43_v38 = vpop.xlane.xlu0 %42 }
  0x91   :  { %v67_v39 = vpop.xlane.xlu1 %66  ;;  %v88_v40 = vmul.f32 0.03125, %v43_v38  ;;  %v119_v42 = vmul.f32 %v865_v36, %v865_v36 }
  0x92   :  { %v96_v41 = vmul.f32 0.03125, %v67_v39  ;;  %v127_v43 = vmul.f32 %v867_v37, %v867_v37 }
  0x93   :  { %v873_v44 = vsub.f32 %v22_v2, %v88_v40  ;;  %v135_v46 = vsel %vm37_vm0, %v119_v42, 0.0 }
  0x94   :  { %v875_v45 = vsub.f32 %v30_v5, %v96_v41  ;;  %136 = vadd.xlane.f32.xlu0 %v135_v46  ;;  %v46_v47 = vpop.xlane.xlu0 %45  ;;  %v159_v49 = vsel %vm37_vm0, %v127_v43, 0.0 }
  0x95   :  { %v49_v48 = vpop.xlane.xlu1 %48  ;;  %v89_v50 = vmul.f32 0.03125, %v46_v47  ;;  %v120_v52 = vmul.f32 %v873_v44, %v873_v44 }
  0x96   :  { %v90_v51 = vmul.f32 0.03125, %v49_v48  ;;  %v128_v53 = vmul.f32 %v875_v45, %v875_v45 }
  0x97   :  { %v883_v54 = vsub.f32 %v23_v8, %v89_v50  ;;  %v138_v56 = vsel %vm37_vm0, %v120_v52, 0.0 }
  0x98   :  { %v885_v55 = vsub.f32 %v24_v9, %v90_v51  ;;  %160 = vadd.xlane.f32.xlu0 %v159_v49  ;;  %139 = vadd.xlane.f32.xlu1 %v138_v56  ;;  %v70_v57 = vpop.xlane.xlu0 %69  ;;  %v162_v59 = vsel %vm37_vm0, %v128_v53, 0.0  ;;  %v683_v53 = vld [vmem:[%s1097_s3] sm:$0xff]  }
  0x99   :  { %v73_v58 = vpop.xlane.xlu1 %72  ;;  %v97_v60 = vmul.f32 0.03125, %v70_v57  ;;  %v121_v62 = vmul.f32 %v883_v54, %v883_v54 }
  0x9a   :  { %v98_v61 = vmul.f32 0.03125, %v73_v58  ;;  %v122_v63 = vmul.f32 %v885_v55, %v885_v55 }
  0x9b   :  { %v894_v0 = vsub.f32 %v798_v12, %v97_v60  ;;  %v141_v2 = vsel %vm37_vm0, %v121_v62, 0.0 }
  0x9c   :  { %v897_v1 = vsub.f32 %v803_v13, %v98_v61  ;;  %163 = vadd.xlane.f32.xlu1 %v162_v59  ;;  %142 = vadd.xlane.f32.xlu0 %v141_v2  ;;  %v52_v3 = vpop.xlane.xlu0 %51  ;;  %v144_v5 = vsel %vm37_vm0, %v122_v63, 0.0 }
  0x9d   :  { %v55_v4 = vpop.xlane.xlu1 %54  ;;  %v91_v6 = vmul.f32 0.03125, %v52_v3  ;;  %v129_v8 = vmul.f32 %v894_v0, %v894_v0 }
  0x9e   :  { %v92_v7 = vmul.f32 0.03125, %v55_v4  ;;  %v130_v9 = vmul.f32 %v897_v1, %v897_v1 }
  0x9f   :  { %v906_v10 = vsub.f32 %v812_v16, %v91_v6  ;;  %v165_v12 = vsel %vm37_vm0, %v129_v8, 0.0 }
  0xa0   :  { %v909_v11 = vsub.f32 %v817_v17, %v92_v7  ;;  %145 = vadd.xlane.f32.xlu1 %v144_v5  ;;  %166 = vadd.xlane.f32.xlu0 %v165_v12  ;;  %v76_v13 = vpop.xlane.xlu0 %75  ;;  %v168_v15 = vsel %vm37_vm0, %v130_v9, 0.0 }
  0xa1   :  { %v79_v14 = vpop.xlane.xlu1 %78  ;;  %v99_v18 = vmul.f32 0.03125, %v76_v13  ;;  %v123_v22 = vmul.f32 %v906_v10, %v906_v10 }
  0xa2   :  { %v100_v19 = vmul.f32 0.03125, %v79_v14  ;;  %v124_v16 = vmul.f32 %v909_v11, %v909_v11 }
  0xa3   :  { %v918_v23 = vsub.f32 %v826_v20, %v99_v18  ;;  %v147_v26 = vsel %vm37_vm0, %v123_v22, 0.0 }
  0xa4   :  { %v921_v17 = vsub.f32 %v831_v21, %v100_v19  ;;  %169 = vadd.xlane.f32.xlu1 %v168_v15  ;;  %148 = vadd.xlane.f32.xlu0 %v147_v26  ;;  %v58_v27 = vpop.xlane.xlu0 %57  ;;  %v150_v31 = vsel %vm37_vm0, %v124_v16, 0.0 }
  0xa5   :  { %v61_v30 = vpop.xlane.xlu1 %60  ;;  %v93_v32 = vmul.f32 0.03125, %v58_v27  ;;  %v131_v34 = vmul.f32 %v918_v23, %v918_v23 }
  0xa6   :  { %v94_v33 = vmul.f32 0.03125, %v61_v30  ;;  %v132_v20 = vmul.f32 %v921_v17, %v921_v17  ;;  %v964_v30 = vld [vmem:[%s1095_s1] ss:$0 sm:$0xff] }
  0xa7   :  { %v930_v35 = vsub.f32 %v840_v24, %v93_v32  ;;  %v171_v38 = vsel %vm37_vm0, %v131_v34, 0.0 }
  0xa8   :  { %v933_v21 = vsub.f32 %v845_v25, %v94_v33  ;;  %151 = vadd.xlane.f32.xlu1 %v150_v31  ;;  %172 = vadd.xlane.f32.xlu0 %v171_v38  ;;  %v82_v39 = vpop.xlane.xlu0 %81  ;;  %v174_v41 = vsel %vm37_vm0, %v132_v20, 0.0  ;;  %v970_v38 = vld [vmem:[%s1096_s2] ss:$0 sm:$0xff] }
  0xa9   :  { %v85_v40 = vpop.xlane.xlu1 %84  ;;  %v101_v42 = vmul.f32 0.03125, %v82_v39  ;;  %v125_v46 = vmul.f32 %v930_v35, %v930_v35 }
  0xaa   :  { %v102_v43 = vmul.f32 0.03125, %v85_v40  ;;  %v126_v24 = vmul.f32 %v933_v21, %v933_v21 }
  0xab   :  { %v942_v47 = vsub.f32 %v854_v28, %v101_v42  ;;  %v153_v48 = vsel %vm37_vm0, %v125_v46, 0.0 }
  0xac   :  { %v945_v25 = vsub.f32 %v859_v29, %v102_v43  ;;  %175 = vadd.xlane.f32.xlu1 %v174_v41  ;;  %154 = vadd.xlane.f32.xlu0 %v153_v48  ;;  %v156_v49 = vsel %vm37_vm0, %v126_v24, 0.0  ;;  %v682_v29 = vld [vmem:[%s1097_s3 + $0x8] sm:$0xff]  }
  0xad   :  { %v133_v50 = vmul.f32 %v942_v47, %v942_v47  ;;  %655 = vmatprep.subr.bf16.mxu0 %v682_v29  ;;  %675 = vmatprep.subr.bf16.mxu1 %v682_v29 }
  0xae   :  { %v134_v51 = vmul.f32 %v945_v25, %v945_v25  ;;  %656 = vmatpush3.bf16.msra.mxu0 %v682_v29  ;;  %677 = vmatpush3.bf16.msra.mxu1 %v682_v29 }
  0xaf   :  { %v177_v52 = vsel %vm37_vm0, %v133_v50, 0.0  ;;  %657 = vmatprep.subr.bf16.mxu0 %v683_v53  ;;  %676 = vmatprep.subr.bf16.mxu1 %v683_v53 }
  0xb0   :  { %157 = vadd.xlane.f32.xlu1 %v156_v49  ;;  %178 = vadd.xlane.f32.xlu0 %v177_v52  ;;  %v180_v28 = vsel %vm37_vm0, %v134_v51, 0.0 }
  0xb2   :  { %658 = vmatpush3.bf16.msra.mxu0 %v683_v53  ;;  %678 = vmatpush3.bf16.msra.mxu1 %v683_v53 }
  0xb4   :  { %181 = vadd.xlane.f32.xlu1 %v180_v28 }
 0x11d   :  { %v137_v56 = vpop.xlane.xlu0 %136 }
 0x11e   :  { %v183_v57 = vmul.f32 0.03125, %v137_v56 }
 0x120   :  { %v199_v58 = vadd.f32 1e-05, %v183_v57 }
 0x121   :  { %v140_v59 = vpop.xlane.xlu1 %139  ;;  %v161_v60 = vpop.xlane.xlu0 %160 }
 0x122   :  { %684 = vrsqrt.f32 %v199_v58  ;;  %v184_v61 = vmul.f32 0.03125, %v140_v59  ;;  %v191_v62 = vmul.f32 0.03125, %v161_v60 }
 0x124   :  { %v200_v63 = vadd.f32 1e-05, %v184_v61  ;;  %v207_v2 = vadd.f32 1e-05, %v191_v62 }
 0x125   :  { %v164_v3 = vpop.xlane.xlu1 %163  ;;  %v143_v4 = vpop.xlane.xlu0 %142 }
 0x126   :  { %686 = vrsqrt.f32 %v200_v63  ;;  %v192_v5 = vmul.f32 0.03125, %v164_v3  ;;  %v185_v6 = vmul.f32 0.03125, %v143_v4 }
 0x127   :  { %688 = vrsqrt.f32 %v207_v2 }
 0x128   :  { %v208_v7 = vadd.f32 1e-05, %v192_v5  ;;  %v201_v8 = vadd.f32 1e-05, %v185_v6 }
 0x129   :  { %v146_v9 = vpop.xlane.xlu1 %145  ;;  %v167_v12 = vpop.xlane.xlu0 %166 }
 0x12a   :  { %690 = vrsqrt.f32 %v208_v7  ;;  %v186_v13 = vmul.f32 0.03125, %v146_v9  ;;  %v193_v14 = vmul.f32 0.03125, %v167_v12 }
 0x12b   :  { %692 = vrsqrt.f32 %v201_v8 }
 0x12c   :  { %v202_v15 = vadd.f32 1e-05, %v186_v13  ;;  %v209_v18 = vadd.f32 1e-05, %v193_v14 }
 0x12d   :  { %v170_v19 = vpop.xlane.xlu1 %169  ;;  %v149_v22 = vpop.xlane.xlu0 %148 }
 0x12e   :  { %694 = vrsqrt.f32 %v202_v15  ;;  %v194_v16 = vmul.f32 0.03125, %v170_v19  ;;  %v187_v26 = vmul.f32 0.03125, %v149_v22 }
 0x12f   :  { %v685_v27 = vpop.eup %684  ;;  %696 = vrsqrt.f32 %v209_v18 }
 0x130   :  { %v210_v31 = vadd.f32 1e-05, %v194_v16  ;;  %v203_v32 = vadd.f32 1e-05, %v187_v26  ;;  %v231_v33 = vmul.f32 %v685_v27, %v865_v36 }
 0x131   :  { %v152_v34 = vpop.xlane.xlu1 %151  ;;  %v173_v20 = vpop.xlane.xlu0 %172 }
 0x132   :  { %698 = vrsqrt.f32 %v210_v31  ;;  %v188_v39 = vmul.f32 0.03125, %v152_v34  ;;  %v195_v40 = vmul.f32 0.03125, %v173_v20  ;;  %v254_v41 = vmul.f32 %v964_v30, %v231_v33 }
 0x133   :  { %v687_v42 = vpop.eup %686  ;;  %700 = vrsqrt.f32 %v203_v32 }
 0x134   :  { %v689_v43 = vpop.eup %688  ;;  %v204_v46 = vadd.f32 1e-05, %v188_v39  ;;  %v211_v24 = vadd.f32 1e-05, %v195_v40  ;;  %v232_v48 = vmul.f32 %v687_v42, %v873_v44  ;;  %v277_v36 = vadd.f32 %v970_v38, %v254_v41 }
 0x135   :  { %v176_v49 = vpop.xlane.xlu1 %175  ;;  %v155_v50 = vpop.xlane.xlu0 %154  ;;  %v239_v51 = vmul.f32 %v689_v43, %v867_v37 }
 0x136   :  { %702 = vrsqrt.f32 %v204_v46  ;;  %v196_v52 = vmul.f32 0.03125, %v176_v49  ;;  %v189_v28 = vmul.f32 0.03125, %v155_v50  ;;  %v255_v29 = vmul.f32 %v964_v30, %v232_v48  ;;  %293 = vst.msk [vmem:[%s1098_s4] sm:$0xff] %vm37_vm0, %v277_v36 }
 0x137   :  { %v691_v53 = vpop.eup %690  ;;  %704 = vrsqrt.f32 %v211_v24  ;;  %v262_v44 = vmul.f32 %v964_v30, %v239_v51 }
 0x138   :  { %v693_v56 = vpop.eup %692  ;;  %v212_v57 = vadd.f32 1e-05, %v196_v52  ;;  %v205_v58 = vadd.f32 1e-05, %v189_v28  ;;  %v278_v59 = vadd.f32 %v970_v38, %v255_v29  ;;  %v240_v37 = vmul.f32 %v691_v53, %v875_v45 }
 0x139   :  { %v158_v60 = vpop.xlane.xlu1 %157  ;;  %v179_v61 = vpop.xlane.xlu0 %178  ;;  %v285_v62 = vadd.f32 %v970_v38, %v262_v44  ;;  %v233_v63 = vmul.f32 %v693_v56, %v883_v54 }
 0x13a   :  { %706 = vrsqrt.f32 %v212_v57  ;;  %v190_v2 = vmul.f32 0.03125, %v158_v60  ;;  %v197_v3 = vmul.f32 0.03125, %v179_v61  ;;  %294 = vst.msk [vmem:[%s1098_s4 + $0x8] sm:$0xff] %vm37_vm0, %v278_v59  ;;  %v309_v4 = vpack.c.bf16 %v278_v59, %v277_v36 }
 0x13b   :  { %v695_v5 = vpop.eup %694  ;;  %708 = vrsqrt.f32 %v205_v58  ;;  %v263_v6 = vmul.f32 %v964_v30, %v240_v37  ;;  %301 = vst.msk [vmem:[%s1098_s4 + $0x40] sm:$0xff] %vm37_vm0, %v285_v62  ;;  %v256_v45 = vmul.f32 %v964_v30, %v233_v63 }
 0x13c   :  { %v697_v54 = vpop.eup %696  ;;  %v206_v7 = vadd.f32 1e-05, %v190_v2  ;;  %v213_v8 = vadd.f32 1e-05, %v197_v3  ;;  %659 = vmatprep.mubr.msk.bf16.mxu0 %vm37_vm0, %v309_v4  ;;  %v234_v9 = vmul.f32 %v695_v5, %v885_v55 }
 0x13d   :  { %v182_v12 = vpop.xlane.xlu1 %181  ;;  %v286_v13 = vadd.f32 %v970_v38, %v263_v6  ;;  %v279_v14 = vadd.f32 %v970_v38, %v256_v45  ;;  %v241_v15 = vmul.f32 %v697_v54, %v894_v0 }
 0x13e   :  { %710 = vrsqrt.f32 %v206_v7  ;;  %v198_v18 = vmul.f32 0.03125, %v182_v12  ;;  %v257_v19 = vmul.f32 %v964_v30, %v234_v9 }
 0x13f   :  { %v699_v22 = vpop.eup %698  ;;  %712 = vrsqrt.f32 %v213_v8  ;;  %302 = vst.msk [vmem:[%s1098_s4 + $0x48] sm:$0xff] %vm37_vm0, %v286_v13  ;;  %v313_v16 = vpack.c.bf16 %v286_v13, %v285_v62  ;;  %295 = vst.msk [vmem:[%s1098_s4 + $0x10] sm:$0xff] %vm37_vm0, %v279_v14  ;;  %v264_v55 = vmul.f32 %v964_v30, %v241_v15 }
 0x140   :  { %v701_v0 = vpop.eup %700  ;;  %v214_v26 = vadd.f32 1e-05, %v198_v18  ;;  %v280_v27 = vadd.f32 %v970_v38, %v257_v19  ;;  %v242_v31 = vmul.f32 %v699_v22, %v897_v1 }
 0x141   :  { %667 = vmatprep.mubr.msk.bf16.mxu1 %vm37_vm0, %v313_v16  ;;  %v287_v32 = vadd.f32 %v970_v38, %v264_v55  ;;  %v235_v33 = vmul.f32 %v701_v0, %v906_v10 }
 0x142   :  { %714 = vrsqrt.f32 %v214_v26  ;;  %296 = vst.msk [vmem:[%s1098_s4 + $0x18] sm:$0xff] %vm37_vm0, %v280_v27  ;;  %v310_v34 = vpack.c.bf16 %v280_v27, %v279_v14  ;;  %v265_v20 = vmul.f32 %v964_v30, %v242_v31 }
 0x143   :  { %v703_v39 = vpop.eup %702  ;;  %303 = vst.msk [vmem:[%s1098_s4 + $0x50] sm:$0xff] %vm37_vm0, %v287_v32  ;;  %v258_v1 = vmul.f32 %v964_v30, %v235_v33 }
 0x144   :  { %v705_v40 = vpop.eup %704  ;;  %660 = vmatmul.mubr.msk.bf16.vlgmr.msra.gmra.mxu0 %vm37_vm0, %v310_v34  ;;  %v288_v10 = vadd.f32 %v970_v38, %v265_v20  ;;  %v236_v41 = vmul.f32 %v703_v39, %v909_v11 }
 0x145   :  { %v281_v42 = vadd.f32 %v970_v38, %v258_v1  ;;  %v243_v43 = vmul.f32 %v705_v40, %v918_v23 }
 0x146   :  { %304 = vst.msk [vmem:[%s1098_s4 + $0x58] sm:$0xff] %vm37_vm0, %v288_v10  ;;  %v314_v46 = vpack.c.bf16 %v288_v10, %v287_v32  ;;  %v259_v24 = vmul.f32 %v964_v30, %v236_v41 }
 0x147   :  { %v707_v48 = vpop.eup %706  ;;  %297 = vst.msk [vmem:[%s1098_s4 + $0x20] sm:$0xff] %vm37_vm0, %v281_v42  ;;  %v266_v11 = vmul.f32 %v964_v30, %v243_v43 }
 0x148   :  { %v709_v36 = vpop.eup %708  ;;  %668 = vmatmul.mubr.msk.bf16.vlgmr.msra.gmra.mxu1 %vm37_vm0, %v314_v46  ;;  %v282_v23 = vadd.f32 %v970_v38, %v259_v24  ;;  %v244_v49 = vmul.f32 %v707_v48, %v921_v17 }
 0x149   :  { %v289_v50 = vadd.f32 %v970_v38, %v266_v11  ;;  %v237_v51 = vmul.f32 %v709_v36, %v930_v35 }
 0x14a   :  { %298 = vst.msk [vmem:[%s1098_s4 + $0x28] sm:$0xff] %vm37_vm0, %v282_v23  ;;  %v311_v52 = vpack.c.bf16 %v282_v23, %v281_v42  ;;  %v267_v28 = vmul.f32 %v964_v30, %v244_v49 }
 0x14b   :  { %v711_v29 = vpop.eup %710  ;;  %305 = vst.msk [vmem:[%s1098_s4 + $0x60] sm:$0xff] %vm37_vm0, %v289_v50  ;;  %v260_v17 = vmul.f32 %v964_v30, %v237_v51 }
 0x14c   :  { %v713_v53 = vpop.eup %712  ;;  %663 = vmatprep.mubr.msk.bf16.mxu0 %vm37_vm0, %v311_v52  ;;  %v290_v35 = vadd.f32 %v970_v38, %v267_v28  ;;  %v238_v44 = vmul.f32 %v711_v29, %v933_v21 }
 0x14d   :  { %v283_v56 = vadd.f32 %v970_v38, %v260_v17  ;;  %v245_v57 = vmul.f32 %v713_v53, %v942_v47 }
 0x14e   :  { %306 = vst.msk [vmem:[%s1098_s4 + $0x68] sm:$0xff] %vm37_vm0, %v290_v35  ;;  %v315_v58 = vpack.c.bf16 %v290_v35, %v289_v50  ;;  %v261_v59 = vmul.f32 %v964_v30, %v238_v44 }
 0x14f   :  { %v715_v37 = vpop.eup %714  ;;  %299 = vst.msk [vmem:[%s1098_s4 + $0x30] sm:$0xff] %vm37_vm0, %v283_v56  ;;  %v268_v21 = vmul.f32 %v964_v30, %v245_v57 }
 0x150   :  { %671 = vmatprep.mubr.msk.bf16.mxu1 %vm37_vm0, %v315_v58  ;;  %v284_v47 = vadd.f32 %v970_v38, %v261_v59  ;;  %v246_v60 = vmul.f32 %v715_v37, %v945_v25 }
 0x151   :  { %v291_v61 = vadd.f32 %v970_v38, %v268_v21 }
 0x152   :  { %300 = vst.msk [vmem:[%s1098_s4 + $0x38] sm:$0xff] %vm37_vm0, %v284_v47  ;;  %v312_v62 = vpack.c.bf16 %v284_v47, %v283_v56  ;;  %v269_v63 = vmul.f32 %v964_v30, %v246_v60 }
 0x153   :  { %307 = vst.msk [vmem:[%s1098_s4 + $0x70] sm:$0xff] %vm37_vm0, %v291_v61 }
 0x154   :  { %664 = vmatmul.mubr.msk.bf16.gmra.mxu0 %vm37_vm0, %v312_v62  ;;  %v292_v2 = vadd.f32 %v970_v38, %v269_v63 }
 0x156   :  { %308 = vst.msk [vmem:[%s1098_s4 + $0x78] sm:$0xff] %vm37_vm0, %v292_v2  ;;  %v316_v25 = vpack.c.bf16 %v292_v2, %v291_v61  ;;  %s738_s4 = smov [#allocation2]  }
 0x157   :  { %s541_s7 = sshll.u32 %s738_s4, 4  ;;  %s542_s7 = int_to_ptr.vmem [resolvable:$true] %s541_s7 }
 0x158   :  { %672 = vmatmul.mubr.msk.bf16.gmra.mxu1 %vm37_vm0, %v316_v25  ;;  %s716_s8 = scalar_lea.vmem %s542_s7, 1024  ;;  %p721_p1 = scmp.lt.s32.totalorder %s542_s7, %s542_s7 }
 0x159   :  { %p717_p0 = scmp.ne.s32.totalorder %s542_s7, %s716_s8  ;;  %p722_p2 = scmp.lt.s32.totalorder %s716_s8, %s716_s8 }
 0x15b   :  { %p723_p3 = por %p722_p2, %p721_p1 }
 0x15d   :  { %p724_p4 = pnand %p723_p3, %p717_p0 }
 0x204   :  { %v661_v3 = vpop.f32.mrf.mxu0 }
 0x206   :  { %v391_v4 = vpop.f32.mrf.mxu0 }
 0x208   :  { %v662_v30 = vpop.f32.mrf.mxu0  ;;  %v669_v5 = vpop.f32.mrf.mxu1 }
 0x209   :  { %v606_v6 = vpack.c.bf16 %v662_v30, %v661_v3 }
 0x20a   :  { %v394_v45 = vpop.f32.mrf.mxu0  ;;  %v423_v54 = vpop.f32.mrf.mxu1 }
 0x20b   :  { %638 = vst [vmem:[#allocation2 + $0x8] sm:$0xff] %v606_v6   ;;  %v601_v7 = vpack.c.bf16 %v394_v45, %v391_v4 }
 0x20c   :  { %v670_v8 = vpop.f32.mrf.mxu1 }
 0x20d   :  { %602 = vst [vmem:[#allocation2] sm:$0xff] %v601_v7   ;;  %v626_v38 = vpack.c.bf16 %v670_v8, %v669_v5 }
 0x20e   :  { %v426_v9 = vpop.f32.mrf.mxu1 }
 0x20f   :  { %642 = vst [vmem:[#allocation2 + $0x28] sm:$0xff] %v626_v38   ;;  %v621_v12 = vpack.c.bf16 %v426_v9, %v423_v54 }
 0x211   :  { %641 = vst [vmem:[#allocation2 + $0x20] sm:$0xff] %v621_v12  }
 0x214   :  { %v665_v13 = vpop.f32.mrf.mxu0 }
 0x216   :  { %v407_v14 = vpop.f32.mrf.mxu0 }
 0x218   :  { %v666_v15 = vpop.f32.mrf.mxu0  ;;  %v673_v18 = vpop.f32.mrf.mxu1 }
 0x219   :  { %v616_v19 = vpack.c.bf16 %v666_v15, %v665_v13 }
 0x21a   :  { %v410_v22 = vpop.f32.mrf.mxu0  ;;  %v439_v16 = vpop.f32.mrf.mxu1 }
 0x21b   :  { %640 = vst [vmem:[#allocation2 + $0x18] sm:$0xff] %v616_v19   ;;  %v611_v55 = vpack.c.bf16 %v410_v22, %v407_v14 }
 0x21c   :  { %v674_v0 = vpop.f32.mrf.mxu1 }
 0x21d   :  { %639 = vst [vmem:[#allocation2 + $0x10] sm:$0xff] %v611_v55   ;;  %v636_v26 = vpack.c.bf16 %v674_v0, %v673_v18 }
 0x21e   :  { %v442_v27 = vpop.f32.mrf.mxu1 }
 0x21f   :  { %644 = vst [vmem:[#allocation2 + $0x38] sm:$0xff] %v636_v26   ;;  %v631_v31 = vpack.c.bf16 %v442_v27, %v439_v16 }
 0x221   :  { %643 = vst [vmem:[#allocation2 + $0x30] sm:$0xff] %v631_v31  }
 0x222   :  { %727 = shalt.err (!%p724_p4)
}
 0x223   :  { %s739_s9 = smov 64   ;;  %s740_s10 = smov 4  }
 0x224   :  { %547 = dma.vmem_to_hbm [thread:$0]  %s542_s7, 1024, %s1099_s5, [#allocation3], %s739_s9, %s739_s9, %s740_s10  }
 0x225   :  { %736 = dma.done.wait [#allocation3], 1024  }
 0x226   :  { %737 = vsyncadd [#allocation3], 4294966272 }
 0x227   :  { %553 = vsyncpa [#allocation3], 1 }

</bundles_post_ra>
